<compile_context>
chip_gen: v6e
topology: v6e:2x2x1
jax: 0.10.0
libtpu: 0.0.40
codegen_flags: <defaults>
</compile_context>

<pallas_src>
import functools
import math

import jax
import jax.numpy as jnp
from jax import lax
from jax.experimental import pallas as pl
from jax.experimental.pallas import tpu as pltpu

LANES = 128
SUBLANES = 8
_EPS = 1e-8
_TILE_BYTES = 2 * 1024 * 1024      # per-f32-plane block budget (~2 MiB)
_MAX_LANE_BLOCK = 8192             # gains plateau; keeps v7x VMEM happy
_MAX_ROW_BLOCK = 1024
_VMEM_LIMIT = 48 * 1024 * 1024     # safe on v5e/v6e (128 MiB) and v7x (64 MiB)


def _round_up(x: int, m: int) -> int:
    return ((x + m - 1) // m) * m


def _softmax_dim(ndim: int) -> int:
    # mirrors torch.nn.functional._get_softmax_dim
    return 0 if ndim in (0, 1, 3) else 1


def _make_kernel(reduce_axis: int, squeeze_leading: bool):
    """log_softmax(|z|, reduce_axis) * z / |z| on one (re, im) f32 block."""

    def kernel(re_ref, im_ref, out_re_ref, out_im_ref):
        if squeeze_leading:                 # block is (1, D, L); view as (D, L)
            re = re_ref[0]
            im = im_ref[0]
        else:                               # block is (rows, D)
            re = re_ref[...]
            im = im_ref[...]

        s = re * re + im * im               # |z|^2
        mag = jnp.sqrt(s)                   # |z|
        m = jnp.max(mag, axis=reduce_axis, keepdims=True)
        ex = jnp.exp(mag - m)
        lse = jnp.log(jnp.sum(ex, axis=reduce_axis, keepdims=True))
        logsm = (mag - m) - lse             # log_softmax(|z|)

        # phase-preserving scale: log_softmax(|z|) / |z|, guarded at |z| ~ 0
        # (re = im = 0 there, so the product is 0 regardless).
        scale = logsm * lax.rsqrt(s + _EPS * _EPS)

        out_re = (re * scale).astype(out_re_ref.dtype)
        out_im = (im * scale).astype(out_im_ref.dtype)
        if squeeze_leading:
            out_re_ref[0] = out_re
            out_im_ref[0] = out_im
        else:
            out_re_ref[...] = out_re
            out_im_ref[...] = out_im

    return kernel


@functools.partial(jax.jit, static_argnames=("dim",))
def mod_log_softmax(x: jax.Array, dim=None) -> jax.Array:
    """mod_log_softmax(z, dim) = log_softmax(|z|, dim) * z / |z| (complex)."""
    assert jnp.iscomplexobj(x), "mod_log_softmax expects a complex input"
    nd = x.ndim
    d = _softmax_dim(nd) if dim is None else dim % nd
    shape = x.shape
    D = shape[d]
    A = math.prod(shape[:d]) if d > 0 else 1
    B = math.prod(shape[d + 1:]) if d + 1 < nd else 1

    # Complex dtypes cannot enter a Mosaic kernel: split into two f32 planes
    # (jit fuses real/imag with the reshape/pad below).
    re = jnp.real(x).astype(jnp.float32)
    im = jnp.imag(x).astype(jnp.float32)

    if B == 1:
        # Softmax axis is the last axis: blocks of (row_block, D), reduce over
        # lanes.  D equals the full last dim so the (8,128) rule is satisfied.
        re2 = re.reshape(A, D)
        im2 = im.reshape(A, D)
        rb = max(_TILE_BYTES // (4 * D), SUBLANES)
        rb = min(rb, _MAX_ROW_BLOCK, _round_up(A, SUBLANES))
        rb = _round_up(rb, SUBLANES)
        Ap = _round_up(A, rb)
        if Ap != A:   # padded rows are all-zero -> harmless, sliced off below
            re2 = jnp.pad(re2, ((0, Ap - A), (0, 0)))
            im2 = jnp.pad(im2, ((0, Ap - A), (0, 0)))
        grid = (Ap // rb,)
        blk = pl.BlockSpec((rb, D), lambda i: (i, 0))
        kernel = _make_kernel(reduce_axis=1, squeeze_leading=False)
        semantics = ("parallel",)
        out_sh = (Ap, D)
    else:
        # Softmax axis sits on sublanes; everything after it is flattened onto
        # a wide, 128-aligned lane axis: blocks of (1, D, lane_block).
        re3 = re.reshape(A, D, B)
        im3 = im.reshape(A, D, B)
        lb = max(_TILE_BYTES // (4 * D), LANES)
        lb = min(lb, _MAX_LANE_BLOCK, _round_up(B, LANES))
        lb = (lb // LANES) * LANES
        Bp = _round_up(B, lb)
        if Bp != B:   # padded lane columns are independent softmaxes of zeros
            re3 = jnp.pad(re3, ((0, 0), (0, 0), (0, Bp - B)))
            im3 = jnp.pad(im3, ((0, 0), (0, 0), (0, Bp - B)))
        re2, im2 = re3, im3
        grid = (A, Bp // lb)
        blk = pl.BlockSpec((1, D, lb), lambda a, b: (a, 0, b))
        kernel = _make_kernel(reduce_axis=0, squeeze_leading=True)
        semantics = ("parallel", "parallel")
        out_sh = (A, D, Bp)

    n = math.prod(out_sh)
    cost = pl.CostEstimate(
        flops=12 * n,
        transcendentals=4 * n,
        bytes_accessed=4 * 4 * n,  # 2 input + 2 output f32 planes
    )

    out_re, out_im = pl.pallas_call(
        kernel,
        out_shape=(
            jax.ShapeDtypeStruct(out_sh, jnp.float32),
            jax.ShapeDtypeStruct(out_sh, jnp.float32),
        ),
        grid_spec=pltpu.PrefetchScalarGridSpec(
            num_scalar_prefetch=0,
            grid=grid,
            in_specs=[blk, blk],
            out_specs=[blk, blk],
        ),
        compiler_params=pltpu.CompilerParams(
            dimension_semantics=semantics,
            vmem_limit_bytes=_VMEM_LIMIT,
        ),
        cost_estimate=cost,
    )(re2, im2)

    if B == 1:
        out_re = out_re[:A].reshape(shape)
        out_im = out_im[:A].reshape(shape)
    else:
        out_re = out_re[:, :, :B].reshape(shape)
        out_im = out_im[:, :, :B].reshape(shape)
    return lax.complex(out_re, out_im).astype(x.dtype)


class ModLogSoftmax:
    """JAX/Pallas port of the PyTorch modLogSoftmax module."""

    def __init__(self, dim=None):
        self.dim = dim

    def __call__(self, x: jax.Array) -> jax.Array:
        return mod_log_softmax(x, dim=self.dim)

    def extra_repr(self) -> str:
        return f"dim={self.dim}"


def _reference_mod_log_softmax(x, dim):
    nd = x.ndim
    d = _softmax_dim(nd) if dim is None else dim % nd
    mag = jnp.abs(x)
    logsm = jax.nn.log_softmax(mag, axis=d)
    phase = x / jnp.maximum(mag, _EPS)
    return (logsm * phase).astype(x.dtype)


if __name__ == "__main__":
    key = jax.random.PRNGKey(0)
    k1, k2 = jax.random.split(key)

    # NCHW complex input, matching the PyTorch convention; dim=None -> dim=1.
    Bn, C, H, W = 2, 4, 16, 16
    xr = jax.random.normal(k1, (Bn, C, H, W), dtype=jnp.float32)
    xi = jax.random.normal(k2, (Bn, C, H, W), dtype=jnp.float32)
    x = lax.complex(xr, xi)  # complex64

    module = ModLogSoftmax(dim=1)
    out = jax.block_until_ready(module(x))
    ref = _reference_mod_log_softmax(x, 1)
    assert out.shape == x.shape and out.dtype == x.dtype
    assert jnp.allclose(out, ref, atol=1e-4, rtol=1e-4)

    # Also exercise the "softmax over the last axis" path.
    k3, k4 = jax.random.split(k2)
    yr = jax.random.normal(k3, (2, 8, 32), dtype=jnp.float32)
    yi = jax.random.normal(k4, (2, 8, 32), dtype=jnp.float32)
    y = lax.complex(yr, yi)
    out2 = jax.block_until_ready(mod_log_softmax(y, dim=-1))
    ref2 = _reference_mod_log_softmax(y, -1)
    assert jnp.allclose(out2, ref2, atol=1e-4, rtol=1e-4)

    print("KERNEL_OK")
</pallas_src>

<mosaic_0001>
module attributes {stable_mosaic.version = 11 : i64} {
  func.func @kernel(%arg0: i32, %arg1: i32, %arg2: memref<1x4x256xf32, #tpu.memory_space<vmem>>, %arg3: memref<1x4x256xf32, #tpu.memory_space<vmem>>, %arg4: memref<1x4x256xf32, #tpu.memory_space<vmem>>, %arg5: memref<1x4x256xf32, #tpu.memory_space<vmem>>) attributes {dimension_semantics = [#tpu.dimension_semantics<parallel>, #tpu.dimension_semantics<parallel>], iteration_bounds = array<i64: 2, 1>, scalar_prefetch = 0 : i64, scratch_operands = 0 : i64, tpu.core_type = #tpu.core_type<tc>, window_params = [{transform_indices = @transform_0, window_bounds = array<i64: 1, 4, 256>}, {transform_indices = @transform_1, window_bounds = array<i64: 1, 4, 256>}, {transform_indices = @transform_2, window_bounds = array<i64: 1, 4, 256>}, {transform_indices = @transform_3, window_bounds = array<i64: 1, 4, 256>}]} {
    %c0 = arith.constant 0 : index
    %c0_0 = arith.constant 0 : index
    %c0_1 = arith.constant 0 : index
    %0 = vector.load %arg2[%c0, %c0_0, %c0_1] : memref<1x4x256xf32, #tpu.memory_space<vmem>>, vector<1x4x256xf32>
    %1 = vector.shape_cast %0 : vector<1x4x256xf32> to vector<4x256xf32>
    %c0_2 = arith.constant 0 : index
    %c0_3 = arith.constant 0 : index
    %c0_4 = arith.constant 0 : index
    %2 = vector.load %arg3[%c0_2, %c0_3, %c0_4] : memref<1x4x256xf32, #tpu.memory_space<vmem>>, vector<1x4x256xf32>
    %3 = vector.shape_cast %2 : vector<1x4x256xf32> to vector<4x256xf32>
    %4 = arith.mulf %1, %1 : vector<4x256xf32>
    %5 = arith.mulf %3, %3 : vector<4x256xf32>
    %6 = arith.addf %4, %5 : vector<4x256xf32>
    %7 = math.sqrt %6 : vector<4x256xf32>
    %cst = arith.constant dense<0xFF800000> : vector<256xf32>
    %8 = vector.multi_reduction <maximumf>, %7, %cst [0] : vector<4x256xf32> to vector<256xf32>
    %9 = vector.shape_cast %8 : vector<256xf32> to vector<1x256xf32>
    %10 = vector.broadcast %9 : vector<1x256xf32> to vector<4x256xf32>
    %11 = arith.subf %7, %10 : vector<4x256xf32>
    %12 = math.exp %11 : vector<4x256xf32>
    %cst_5 = arith.constant dense<0.000000e+00> : vector<256xf32>
    %13 = vector.multi_reduction <add>, %12, %cst_5 [0] : vector<4x256xf32> to vector<256xf32>
    %14 = vector.shape_cast %13 : vector<256xf32> to vector<1x256xf32>
    %15 = math.log %14 : vector<1x256xf32>
    %16 = vector.broadcast %9 : vector<1x256xf32> to vector<4x256xf32>
    %17 = arith.subf %7, %16 : vector<4x256xf32>
    %18 = vector.broadcast %15 : vector<1x256xf32> to vector<4x256xf32>
    %19 = arith.subf %17, %18 : vector<4x256xf32>
    %cst_6 = arith.constant 1.000000e-16 : f32
    %20 = vector.broadcast %cst_6 : f32 to vector<4x256xf32>
    %21 = arith.addf %6, %20 : vector<4x256xf32>
    %22 = math.rsqrt %21 : vector<4x256xf32>
    %23 = arith.mulf %19, %22 : vector<4x256xf32>
    %24 = arith.mulf %1, %23 : vector<4x256xf32>
    %25 = arith.mulf %3, %23 : vector<4x256xf32>
    %c0_7 = arith.constant 0 : index
    %c0_8 = arith.constant 0 : index
    %c0_9 = arith.constant 0 : index
    %26 = vector.load %arg4[%c0_7, %c0_8, %c0_9] : memref<1x4x256xf32, #tpu.memory_space<vmem>>, vector<1x4x256xf32>
    %27 = vector.shape_cast %26 : vector<1x4x256xf32> to vector<4x256xf32>
    %28 = vector.shape_cast %24 : vector<4x256xf32> to vector<1x4x256xf32>
    tpu.vector_store %arg4[%c0_7, %c0_8, %c0_9], %28 {strides = array<i32>} : memref<1x4x256xf32, #tpu.memory_space<vmem>>, vector<1x4x256xf32>,
    %c0_10 = arith.constant 0 : index
    %c0_11 = arith.constant 0 : index
    %c0_12 = arith.constant 0 : index
    %29 = vector.load %arg5[%c0_10, %c0_11, %c0_12] : memref<1x4x256xf32, #tpu.memory_space<vmem>>, vector<1x4x256xf32>
    %30 = vector.shape_cast %29 : vector<1x4x256xf32> to vector<4x256xf32>
    %31 = vector.shape_cast %25 : vector<4x256xf32> to vector<1x4x256xf32>
    tpu.vector_store %arg5[%c0_10, %c0_11, %c0_12], %31 {strides = array<i32>} : memref<1x4x256xf32, #tpu.memory_space<vmem>>, vector<1x4x256xf32>,
    return
  }
  func.func @transform_0(%arg0: i32, %arg1: i32) -> (i32, i32, i32) {
    %c0_i32 = arith.constant 0 : i32
    %c0_i32_0 = arith.constant 0 : i32
    return %arg0, %c0_i32, %arg1 : i32, i32, i32
  }
  func.func @transform_1(%arg0: i32, %arg1: i32) -> (i32, i32, i32) {
    %c0_i32 = arith.constant 0 : i32
    %c0_i32_0 = arith.constant 0 : i32
    return %arg0, %c0_i32, %arg1 : i32, i32, i32
  }
  func.func @transform_2(%arg0: i32, %arg1: i32) -> (i32, i32, i32) {
    %c0_i32 = arith.constant 0 : i32
    %c0_i32_0 = arith.constant 0 : i32
    return %arg0, %c0_i32, %arg1 : i32, i32, i32
  }
  func.func @transform_3(%arg0: i32, %arg1: i32) -> (i32, i32, i32) {
    %c0_i32 = arith.constant 0 : i32
    %c0_i32_0 = arith.constant 0 : i32
    return %arg0, %c0_i32, %arg1 : i32, i32, i32
  }
}

</mosaic_0001>

<bundles_post_ra>
// kernel: custom-call.1
= control target key start
LH: loop header
LB: loop body
LE: loop exit
PB: predicated region body
PF: predicated region fallthrough
CT: control target
= control target key end

     0   :  { %s51_s0 = inlined_call_operand.hbm [shape: c64[2,4,16,16], index: 0, kind: input, shape index: {}]   ;;  %s52_s1 = inlined_call_operand.vmem [shape: f32[2,4,16,16], index: 1, kind: output, shape index: {}]  }
   0x1   :  { %s2_s8 = scalar_lea.hbm %s51_s0, 2048 }
   0x2   :  { %3 = vsyncpa [#allocation0], 0  ;;  %s4_s11 = sshll.u32 %s52_s1, 4  ;;  %s5_s11 = int_to_ptr.vmem [resolvable:$true] %s4_s11 }
   0x3   :  { %s20_s12 = scalar_lea.vmem %s5_s11, 2048  ;;  %p25_p1 = scmp.lt.s32.totalorder %s5_s11, %s5_s11 }
   0x4   :  { %p21_p0 = scmp.ne.s32.totalorder %s5_s11, %s20_s12  ;;  %p26_p2 = scmp.lt.s32.totalorder %s20_s12, %s20_s12 }
   0x6   :  { %p27_p3 = por %p26_p2, %p25_p1 }
   0x8   :  { %p28_p4 = pnand %p27_p3, %p21_p0 }
   0xa   :  { %31 = shalt.err (!%p28_p4)  }
   0xb   :  { %7 = dma.hbm_to_vmem [thread:$0]  %s2_s8, 2048, %s5_s11, [#allocation0] }
   0xc   :  { %33 = dma.done.wait [#allocation0], 2048  }
   0xd   :  { %34 = vsyncadd [#allocation0], 4294965248 }
   0xe   :  { %9 = vsyncpa [#allocation0], 1 }

// kernel: custom-call
= control target key start
LH: loop header
LB: loop body
LE: loop exit
PB: predicated region body
PF: predicated region fallthrough
CT: control target
= control target key end

     0   :  { %2 = vsyncpa [#allocation0], 0  ;;  %s47_s0 = inlined_call_operand.hbm [shape: c64[2,4,16,16], index: 0, kind: input, shape index: {}]   ;;  %s48_s1 = inlined_call_operand.vmem [shape: f32[2,4,16,16], index: 1, kind: output, shape index: {}]  }
   0x1   :  { %s3_s8 = sshll.u32 %s48_s1, 4  ;;  %s4_s8 = int_to_ptr.vmem [resolvable:$true] %s3_s8 }
   0x2   :  { %s17_s9 = scalar_lea.vmem %s4_s8, 2048  ;;  %p22_p1 = scmp.lt.s32.totalorder %s4_s8, %s4_s8 }
   0x3   :  { %p18_p0 = scmp.ne.s32.totalorder %s4_s8, %s17_s9  ;;  %p23_p2 = scmp.lt.s32.totalorder %s17_s9, %s17_s9 }
   0x5   :  { %p24_p3 = por %p23_p2, %p22_p1 }
   0x7   :  { %p25_p4 = pnand %p24_p3, %p18_p0 }
   0x9   :  { %28 = shalt.err (!%p25_p4)  }
   0xa   :  { %6 = dma.hbm_to_vmem [thread:$0]  %s47_s0, 2048, %s4_s8, [#allocation0] }
   0xb   :  { %29 = dma.done.wait [#allocation0], 2048  }
   0xc   :  { %30 = vsyncadd [#allocation0], 4294965248 }
   0xd   :  { %8 = vsyncpa [#allocation0], 1 }

// kernel: custom-call.2
= control target key start
LH: loop header
LB: loop body
LE: loop exit
PB: predicated region body
PF: predicated region fallthrough
CT: control target
= control target key end

     0   :  { %s92_s0 = inlined_call_operand.vmem [shape: f32[2,4,16,16], index: 0, kind: input, shape index: {}]   ;;  %s93_s1 = inlined_call_operand.vmem [shape: f32[2,4,16,16], index: 1, kind: input, shape index: {}]   ;;  %s94_s2 = inlined_call_operand.hbm [shape: c64[2,4,16,16], index: 2, kind: output, shape index: {}]  }
   0x1   :  { %s3_s11 = scalar_lea.hbm %s94_s2, 2048 }
   0x2   :  { %4 = vsyncpa [#allocation0], 0  ;;  %s5_s14 = sshll.u32 %s92_s0, 4  ;;  %s6_s14 = int_to_ptr.vmem [resolvable:$true] %s5_s14 }
   0x3   :  { %s18_s15 = scalar_lea.vmem %s6_s14, 2048  ;;  %p23_p1 = scmp.lt.s32.totalorder %s6_s14, %s6_s14 }
   0x4   :  { %p19_p0 = scmp.ne.s32.totalorder %s6_s14, %s18_s15  ;;  %p24_p2 = scmp.lt.s32.totalorder %s18_s15, %s18_s15 }
   0x6   :  { %p25_p3 = por %p24_p2, %p23_p1 }
   0x8   :  { %p26_p4 = pnand %p25_p3, %p19_p0 }
   0xa   :  { %29 = shalt.err (!%p26_p4)  }
   0xb   :  { %8 = dma.vmem_to_hbm [thread:$0]  %s6_s14, 2048, %s94_s2, [#allocation0] }
   0xc   :  { %61 = dma.done.wait [#allocation0], 2048  }
   0xd   :  { %62 = vsyncadd [#allocation0], 4294965248 }
   0xe   :  { %10 = vsyncpa [#allocation0], 1 }
   0xf   :  { %11 = vsyncpa [#allocation1], 0  ;;  %s12_s0 = sshll.u32 %s93_s1, 4  ;;  %s13_s0 = int_to_ptr.vmem [resolvable:$true] %s12_s0 }
  0x10   :  { %s38_s20 = scalar_lea.vmem %s13_s0, 2048  ;;  %p43_p6 = scmp.lt.s32.totalorder %s13_s0, %s13_s0 }
  0x11   :  { %p39_p5 = scmp.ne.s32.totalorder %s13_s0, %s38_s20  ;;  %p44_p7 = scmp.lt.s32.totalorder %s38_s20, %s38_s20 }
  0x13   :  { %p45_p8 = por %p44_p7, %p43_p6 }
  0x15   :  { %p46_p9 = pnand %p45_p8, %p39_p5 }
  0x17   :  { %49 = shalt.err (!%p46_p9)  }
  0x18   :  { %15 = dma.vmem_to_hbm [thread:$0]  %s13_s0, 2048, %s3_s11, [#allocation1] }
  0x19   :  { %63 = dma.done.wait [#allocation1], 2048  }
  0x1a   :  { %64 = vsyncadd [#allocation1], 4294965248 }
  0x1b   :  { %17 = vsyncpa [#allocation1], 1 }

// kernel: mod_log_softmax.1
= control target key start
LH: loop header
LB: loop body
LE: loop exit
PB: predicated region body
PF: predicated region fallthrough
CT: control target
= control target key end

     0   :  { %s592_s12 = smov 0   ;;  %s594_s13 = smov 0   ;;  %s651_s0 = inlined_call_operand.vmem [shape: f32[2,4,256], index: 0, kind: input, shape index: {}]   ;;  %s652_s1 = inlined_call_operand.vmem [shape: f32[2,4,256], index: 1, kind: input, shape index: {}]   ;;  %s653_s2 = inlined_call_operand.vmem [shape: f32[2,4,256], index: 2, kind: output, shape index: {0}]   ;;  %s654_s3 = inlined_call_operand.vmem [shape: f32[2,4,256], index: 3, kind: output, shape index: {1}]  }
   0x1   :  { %s596_s14 = smov 0  }
   0x2 LB: > { %s26_s15 = sadd.s32 1, %s566_s13  ;;  %p499_p0 = scmp.ge.s32.totalorder %s570_s14, 1  ;;  %s570_s14 = sphi %s596_s14, %s14_s14   ;;  %s566_s13 = sphi %s594_s13, %s656_s13   ;;  %s562_s12 = sphi %s592_s12, %s655_s12  }
   0x3   : > { %p28_p1 = scmp.ge.s32.totalorder %s26_s15, 2  ;;  %p180_p2 = scmp.lt.s32.totalorder %s570_s14, 3 }
   0x5   : > { %s658_s15 = smov (%p28_p1, %s26_s15), 0  ;;  %p181_p3 = pnand %p499_p0, %p180_p2 }
   0x6   : > { %p231_p4 = scmp.lt.s32.totalorder (!%p181_p3), %s562_s12, 1 }
   0x7   : > { %184 = sbr.rel (%p181_p3) target bundleno = 114 (0x72), region = 28 }
   0xc   : > { %s660_s12 = smov (!%p231_p4, %s562_s12), 1  ;;  %vm285_vm2 = vcmask 1043456  }
   0xd   : > { %s610_s16 = sshll.u32 %s660_s12, 3 }
   0xe   : > { %s238_s19 = scalar_lea.vmem %s651_s0, %s610_s16  ;;  %s248_s22 = scalar_lea.vmem %s652_s1, %s610_s16 }
   0xf   : > { %v620_v0 = vld [vmem:[%s238_s19] sm:$0xff]  ;;  %s258_s25 = scalar_lea.vmem %s653_s2, %s610_s16  ;;  %s268_s28 = scalar_lea.vmem %s654_s3, %s610_s16 }
  0x10   : > { %v622_v1 = vld [vmem:[%s248_s22] sm:$0xff]  ;;  %v272_v2 = vmul.f32 %v620_v0, %v620_v0 }
  0x11   : > { %v273_v3 = vmul.f32 %v622_v1, %v622_v1 }
  0x13   : > { %v274_v4 = vadd.f32 %v273_v3, %v272_v2 }
  0x15   : > { %538 = vrsqrt.f32 %v274_v4  ;;  %vm277_vm0 = vcmp.eq.f32.partialorder %v274_v4, inf  ;;  %v280_v6 = vand.u32 2147483648, %v274_v4  ;;  %vm279_vm1 = vcmp.eq.f32.partialorder %v274_v4, 0.0 }
  0x16   : > { %v333_v44 = vadd.f32 1e-16, %v274_v4 }
  0x22   : > { %v539_v5 = vpop.eup %538 }
  0x23   : > { %v276_v7 = vmul.f32 %v539_v5, %v274_v4 }
  0x25   : > { %v278_v8 = vsel %vm277_vm0, %v274_v4, %v276_v7 }
  0x26   : > { %v281_v9 = vsel %vm279_vm1, %v280_v6, %v278_v8 }
  0x27   : > { %v283_v10 = vcombine.high %v281_v9, %v281_v9  ;;  %v286_v11 = vsel %vm285_vm2, %v281_v9, -inf }
  0x28   : > { %v287_v12 = vrot.slane %v286_v11, 4 }
  0x29   : > { %v293_v13 = vsel %vm285_vm2, %v283_v10, -inf }
  0x2a   : > { %v288_v14 = vmax.f32 %v286_v11, %v287_v12  ;;  %v294_v15 = vrot.slane %v293_v13, 4 }
  0x2c   : > { %v289_v16 = vrot.slane %v288_v14, 2  ;;  %v295_v17 = vmax.f32 %v293_v13, %v294_v15 }
  0x2e   : > { %v290_v18 = vmax.f32 %v288_v14, %v289_v16  ;;  %v296_v19 = vrot.slane %v295_v17, 2 }
  0x30   : > { %v291_v20 = vrot.slane %v290_v18, 1  ;;  %v297_v21 = vmax.f32 %v295_v17, %v296_v19 }
  0x32   : > { %v292_v22 = vmax.f32 %v290_v18, %v291_v20  ;;  %v298_v23 = vrot.slane %v297_v21, 1 }
  0x34   : > { %v299_v24 = vmax.f32 %v297_v21, %v298_v23 }
  0x36   : > { %v302_v25 = vcombine.low %v292_v22, %v299_v24 }
  0x38   : > { %v304_v26 = vsub.f32 %v281_v9, %v302_v25 }
  0x3a   : > { %v305_v27 = vmul.f32 1.442695, %v304_v26 }
  0x3c   : > { %540 = vpow2.f32 %v305_v27 }
  0x49   : > { %v541_v28 = vpop.eup %540 }
  0x4a   : > { %v308_v29 = vcombine.high %v541_v28, %v541_v28  ;;  %v310_v30 = vsel %vm285_vm2, %v541_v28, 0.0 }
  0x4b   : > { %v311_v31 = vrot.slane %v310_v30, 4 }
  0x4c   : > { %v317_v32 = vsel %vm285_vm2, %v308_v29, 0.0 }
  0x4d   : > { %v312_v33 = vadd.f32 %v311_v31, %v310_v30  ;;  %v318_v34 = vrot.slane %v317_v32, 4 }
  0x4f   : > { %v313_v35 = vrot.slane %v312_v33, 2  ;;  %v319_v36 = vadd.f32 %v318_v34, %v317_v32 }
  0x51   : > { %v314_v37 = vadd.f32 %v313_v35, %v312_v33  ;;  %v320_v38 = vrot.slane %v319_v36, 2 }
  0x53   : > { %v315_v39 = vrot.slane %v314_v37, 1  ;;  %v321_v40 = vadd.f32 %v320_v38, %v319_v36 }
  0x55   : > { %v316_v41 = vadd.f32 %v315_v39, %v314_v37  ;;  %v322_v42 = vrot.slane %v321_v40, 1 }
  0x57   : > { %v323_v43 = vadd.f32 %v322_v42, %v321_v40  ;;  %542 = vlog2.f32 %v316_v41 }
  0x59   : > { %544 = vlog2.f32 %v323_v43 }
  0x5a   : > { %546 = vrsqrt.f32 %v333_v44 }
  0x64   : > { %v543_v45 = vpop.eup %542 }
  0x65   : > { %v325_v46 = vmul.f32 0.6931472, %v543_v45 }
  0x66   : > { %v545_v47 = vpop.eup %544 }
  0x67   : > { %v327_v48 = vmul.f32 0.6931472, %v545_v47  ;;  %v547_v50 = vpop.eup %546 }
  0x69   : > { %v330_v49 = vcombine.low %v325_v46, %v327_v48 }
  0x6b   : > { %v332_v51 = vsub.f32 %v304_v26, %v330_v49 }
  0x6d   : > { %v335_v52 = vmul.f32 %v547_v50, %v332_v51 }
  0x6f   : > { %v336_v53 = vmul.f32 %v335_v52, %v620_v0  ;;  %v337_v54 = vmul.f32 %v335_v52, %v622_v1 }
  0x71   : > { %338 = vst [vmem:[%s258_s25] sm:$0xff] %v336_v53  ;;  %339 = vst [vmem:[%s268_s28] sm:$0xff] %v337_v54 }
  0x72 PF: > { %s14_s14 = sadd.s32 1, %s570_s14   ;;  %s655_s12 = smov %s566_s13 }
  0x73   : > { %p11_p5 = scmp.ge.s32.totalorder %s14_s14, 4   ;;  %s656_s13 = smov %s658_s15 }
  0x75   :  { %13 = sbr.rel (!%p11_p5) target bundleno = 2 (0x2), region = 73 }

</bundles_post_ra>
